<compile_context>
chip_gen: v7x
topology: tpu7x:2x2x1
jax: 0.10.0
libtpu: 0.0.40
codegen_flags: <defaults>
</compile_context>

<pallas_src>
import jax
import jax.numpy as jnp
from jax.experimental import pallas as pl
from jax.experimental.pallas import tpu as pltpu


def _hardswish(v):
    """Full hardswish (used only by the plain-JAX reference)."""
    return v * jnp.clip(v + 3.0, 0.0, 6.0) * (1.0 / 6.0)


def _hswish6(v):
    """hardswish * 6 — the 1/6 is folded into the next linear op's weights."""
    return v * jnp.clip(v + 3.0, 0.0, 6.0)


def _make_kernel(W, K, P):
    pad = K // 2
    offs = [d for d in range(-pad, pad + 1) if d != 0]   # nonzero shift offsets

    def kernel(x_ref, w1_ref, t1_ref, dw_ref, t2_ref, w3_ref, t3_ref,
               m_ref, o_ref):
        x = x_ref[...]                                         # (Cin, P)

        # ---- inverted_conv: 1x1 conv (BN scale folded into w1) + hardswish
        #      (its 1/6 folded into dwf, so this computes 6*hardswish).
        z = jnp.dot(w1_ref[...], x, preferred_element_type=jnp.float32)
        h = _hswish6(z + t1_ref[...])                          # (Cmid, P)

        dw_taps = dw_ref[...]                                  # (Cmid, K*K)
        masks = m_ref[...]                                     # (2*(K-1), P)

        # ---- depth_conv: KxK depthwise, row/column-factorized lane rolls.
        # Horizontal (column) shifts of h, computed ONCE and column-edge
        # masked; reused by every kernel row below.
        h_col = {0: h}
        for j, dv in enumerate(offs):
            rolled = pltpu.roll(h, (-dv) % P, axis=1)          # XLU rotate
            h_col[dv] = rolled * masks[j:j + 1, :]

        acc = None
        for kh in range(K):
            dh = kh - pad
            # Per-kernel-row weighted sum over the shared column shifts.
            s = None
            for kw in range(K):
                dv = kw - pad
                idx = kh * K + kw
                tap = dw_taps[:, idx:idx + 1]                  # (Cmid, 1)
                term = h_col[dv] * tap
                s = term if s is None else s + term
            if dh != 0:
                # One vertical roll of the already-weighted row sum + row mask.
                s = pltpu.roll(s, (-(dh * W)) % P, axis=1)
                ridx = (K - 1) + offs.index(dh)
                s = s * masks[ridx:ridx + 1, :]
            acc = s if acc is None else acc + s
        y = _hswish6(acc + t2_ref[...])                        # (Cmid, P)

        # ---- point_conv: 1x1 conv (BN + second hardswish 1/6 folded into w3)
        #      + residual add.
        out = jnp.dot(w3_ref[...], y, preferred_element_type=jnp.float32)
        o_ref[...] = x + out + t3_ref[...]                     # (Cout, P)

    return kernel


def _pick_images_per_step(N, H, W, Cin, Cmid, Cout, budget_bytes=24 << 20):
    """Largest per-step image count that fits a conservative VMEM budget,
    preferring >=2 grid steps so a 2-TC chip (v7x) can shard the grid."""
    pix = H * W
    # Rough per-image f32 bytes live per grid step: double-buffered x/out
    # blocks + ~6 Cmid-wide intermediates (h, masked col-rolls, row sum, acc,
    # y) + the small boundary-mask block.
    per_image = 4 * pix * (2 * (Cin + Cout) + 6 * Cmid + 4)
    cap = max(1, int(budget_bytes // per_image))
    # Candidate splits: divisors of N whose pixel block is lane-aligned
    # (P % 128 == 0) or spans the full pixel axis.
    cands = [d for d in range(1, N + 1)
             if N % d == 0 and ((d * pix) % 128 == 0 or d == N)]
    fitting = [d for d in cands if d <= cap] or [min(cands)]
    ips = max(fitting)
    # Keep >=2 "parallel" steps when possible (megacore sharding on v7x;
    # ~0.35us extra per step on single-TC v5e/v6e is negligible).
    if ips == N and N >= 2:
        halves = [d for d in fitting if d <= N // 2]
        if halves:
            ips = max(halves)
    return ips


def res_mbconv(x_nchw, kparams, *, kernel_size=3, images_per_step=None):
    """x_nchw: (N, Cin, H, W) f32 -> (N, Cout, H, W) f32.  stride == 1 only."""
    N, Cin, H, W = x_nchw.shape
    K = kernel_size
    pad = K // 2
    Cmid = kparams["w1f"].shape[0]
    Cout = kparams["w3f"].shape[0]
    assert Cout == Cin, "residual requires out_channels == in_channels"

    if images_per_step is None:
        images_per_step = _pick_images_per_step(N, H, W, Cin, Cmid, Cout)
    assert N % images_per_step == 0
    P = images_per_step * H * W
    steps = N // images_per_step
    assert P % 128 == 0 or steps == 1, "pixel block must be lane-aligned"

    # Layout plumbing (outside the kernel): NCHW -> (C, N*H*W), pixels on lanes.
    x_cp = jnp.transpose(x_nchw, (1, 0, 2, 3)).reshape(Cin, N * H * W)

    # Precomputed, factorized image-boundary masks (column masks then row
    # masks), identical for every grid step — keeps //, % and bool->select
    # work out of the kernel entirely.
    lane = jnp.arange(P, dtype=jnp.int32)
    col = lane % W
    row = (lane // W) % H
    offs = [d for d in range(-pad, pad + 1) if d != 0]
    masks = jnp.stack(
        [((col + d >= 0) & (col + d < W)).astype(jnp.float32) for d in offs]
        + [((row + d >= 0) & (row + d < H)).astype(jnp.float32) for d in offs],
        axis=0)                                                # (2*(K-1), P)

    full = lambda a: pl.BlockSpec(a.shape, lambda i: (0, 0))

    out_flat = pl.pallas_call(
        _make_kernel(W, K, P),
        out_shape=jax.ShapeDtypeStruct((Cout, N * H * W), jnp.float32),
        grid_spec=pltpu.PrefetchScalarGridSpec(
            num_scalar_prefetch=0,
            grid=(steps,),
            in_specs=[
                pl.BlockSpec((Cin, P), lambda i: (0, i)),
                full(kparams["w1f"]), full(kparams["t1"]),
                full(kparams["dwf"]), full(kparams["t2"]),
                full(kparams["w3f"]), full(kparams["t3"]),
                full(masks),
            ],
            out_specs=pl.BlockSpec((Cout, P), lambda i: (0, i)),
        ),
        compiler_params=pltpu.CompilerParams(
            dimension_semantics=("parallel",)),
    )(x_cp, kparams["w1f"], kparams["t1"], kparams["dwf"], kparams["t2"],
      kparams["w3f"], kparams["t3"], masks)

    return jnp.transpose(out_flat.reshape(Cout, N, H, W), (1, 0, 2, 3))


# ----------------------------------------------------------------------------
# Parameter construction (PyTorch-style raw params) and one-time folding.
# ----------------------------------------------------------------------------
def make_params(key, in_channels, out_channels, kernel_size=3, expand_ratio=6):
    mid = round(in_channels * expand_ratio)
    K = kernel_size
    ks = jax.random.split(key, 18)

    def bn_params(i, c):
        gamma = jax.random.uniform(ks[i], (c,), minval=0.5, maxval=1.5)
        beta = 0.1 * jax.random.normal(ks[i + 1], (c,))
        mean = 0.1 * jax.random.normal(ks[i + 2], (c,))
        var = jax.random.uniform(ks[i + 3], (c,), minval=0.5, maxval=1.5)
        return gamma, beta, mean, var

    return dict(
        w1=0.2 * jax.random.normal(ks[0], (mid, in_channels)),     # 1x1 conv
        b1=0.1 * jax.random.normal(ks[1], (mid,)),
        bn1=bn_params(2, mid),
        dw=0.2 * jax.random.normal(ks[6], (mid, K, K)),            # depthwise
        b2=0.1 * jax.random.normal(ks[7], (mid,)),
        bn2=bn_params(8, mid),
        w3=0.2 * jax.random.normal(ks[12], (out_channels, mid)),   # 1x1, no bias
        bn3=bn_params(13, out_channels),
    )


def fold_params(raw, eps=1e-5):
    """Fold inference-mode BN + conv biases + the two hardswish 1/6 constants
    into per-channel-scaled weights and additive shifts."""
    def bn_fold(bn):
        gamma, beta, mean, var = bn
        return gamma / jnp.sqrt(var + eps), beta, mean

    s1, beta1, mean1 = bn_fold(raw["bn1"])
    s2, beta2, mean2 = bn_fold(raw["bn2"])
    s3, beta3, mean3 = bn_fold(raw["bn3"])
    mid = raw["w1"].shape[0]
    cout = raw["w3"].shape[0]
    K = raw["dw"].shape[1]

    kp = dict(
        w1f=raw["w1"] * s1[:, None],                                 # (Cmid, Cin)
        t1=((raw["b1"] - mean1) * s1 + beta1).reshape(mid, 1),
        # 1/6 of the FIRST hardswish folded into the depthwise weights:
        dwf=(raw["dw"] * (s2 / 6.0)[:, None, None]).reshape(mid, K * K),
        t2=((raw["b2"] - mean2) * s2 + beta2).reshape(mid, 1),
        # 1/6 of the SECOND hardswish folded into the pointwise weights:
        w3f=raw["w3"] * (s3 / 6.0)[:, None],                         # (Cout, Cmid)
        t3=(beta3 - mean3 * s3).reshape(cout, 1),
    )
    return {k: v.astype(jnp.float32) for k, v in kp.items()}


def ref_forward(x_nchw, raw, kernel_size=3, eps=1e-5):
    """Plain-JAX NCHW reference mirroring the eval-mode PyTorch forward."""
    K = kernel_size
    pad = K // 2
    N, Cin, H, W = x_nchw.shape

    def bn_apply(v, bn):
        gamma, beta, mean, var = bn
        scale = gamma / jnp.sqrt(var + eps)
        return ((v - mean[None, :, None, None]) * scale[None, :, None, None]
                + beta[None, :, None, None])

    z = jnp.einsum("mc,nchw->nmhw", raw["w1"], x_nchw) \
        + raw["b1"][None, :, None, None]
    z = _hardswish(bn_apply(z, raw["bn1"]))

    zp = jnp.pad(z, ((0, 0), (0, 0), (pad, pad), (pad, pad)))
    acc = jnp.zeros_like(z)
    for kh in range(K):
        for kw in range(K):
            acc = acc + (zp[:, :, kh:kh + H, kw:kw + W]
                         * raw["dw"][:, kh, kw][None, :, None, None])
    acc = acc + raw["b2"][None, :, None, None]
    y = _hardswish(bn_apply(acc, raw["bn2"]))

    out = jnp.einsum("om,nmhw->nohw", raw["w3"], y)
    out = bn_apply(out, raw["bn3"])
    return x_nchw + out


if __name__ == "__main__":
    key = jax.random.PRNGKey(0)
    k_x, k_p = jax.random.split(key)

    N, Cin, H, W = 2, 4, 16, 16          # NCHW, matching the PyTorch module
    Cout, K, expand = 4, 3, 6

    x = jax.random.normal(k_x, (N, Cin, H, W), dtype=jnp.float32)
    raw = make_params(k_p, Cin, Cout, kernel_size=K, expand_ratio=expand)
    kp = fold_params(raw)

    out = res_mbconv(x, kp, kernel_size=K)
    out = jax.block_until_ready(out)

    ref = ref_forward(x, raw, kernel_size=K)
    assert out.shape == (N, Cout, H, W)
    assert jnp.allclose(out, ref, atol=1e-4, rtol=1e-4), "mismatch vs reference"

    print("KERNEL_OK")
</pallas_src>

<mosaic_0001>
module attributes {stable_mosaic.version = 11 : i64} {
  func.func @kernel(%arg0: i32, %arg1: memref<4x256xf32, #tpu.memory_space<vmem>>, %arg2: memref<24x4xf32, #tpu.memory_space<vmem>>, %arg3: memref<24x1xf32, #tpu.memory_space<vmem>>, %arg4: memref<24x9xf32, #tpu.memory_space<vmem>>, %arg5: memref<24x1xf32, #tpu.memory_space<vmem>>, %arg6: memref<4x24xf32, #tpu.memory_space<vmem>>, %arg7: memref<4x1xf32, #tpu.memory_space<vmem>>, %arg8: memref<4x256xf32, #tpu.memory_space<vmem>>, %arg9: memref<4x256xf32, #tpu.memory_space<vmem>>) attributes {dimension_semantics = [#tpu.dimension_semantics<parallel>], iteration_bounds = array<i64: 2>, scalar_prefetch = 0 : i64, scratch_operands = 0 : i64, tpu.core_type = #tpu.core_type<tc>, window_params = [{transform_indices = @transform_0, window_bounds = array<i64: 4, 256>}, {pipeline_mode = #tpu.pipeline_mode<synchronous>, transform_indices = @transform_1, window_bounds = array<i64: 24, 4>}, {pipeline_mode = #tpu.pipeline_mode<synchronous>, transform_indices = @transform_2, window_bounds = array<i64: 24, 1>}, {pipeline_mode = #tpu.pipeline_mode<synchronous>, transform_indices = @transform_3, window_bounds = array<i64: 24, 9>}, {pipeline_mode = #tpu.pipeline_mode<synchronous>, transform_indices = @transform_4, window_bounds = array<i64: 24, 1>}, {pipeline_mode = #tpu.pipeline_mode<synchronous>, transform_indices = @transform_5, window_bounds = array<i64: 4, 24>}, {pipeline_mode = #tpu.pipeline_mode<synchronous>, transform_indices = @transform_6, window_bounds = array<i64: 4, 1>}, {pipeline_mode = #tpu.pipeline_mode<synchronous>, transform_indices = @transform_7, window_bounds = array<i64: 4, 256>}, {transform_indices = @transform_8, window_bounds = array<i64: 4, 256>}]} {
    %c0 = arith.constant 0 : index
    %c0_0 = arith.constant 0 : index
    %0 = vector.load %arg1[%c0, %c0_0] : memref<4x256xf32, #tpu.memory_space<vmem>>, vector<4x256xf32>
    %c0_1 = arith.constant 0 : index
    %c0_2 = arith.constant 0 : index
    %1 = vector.load %arg2[%c0_1, %c0_2] : memref<24x4xf32, #tpu.memory_space<vmem>>, vector<24x4xf32>
    %cst = arith.constant dense<0.000000e+00> : vector<24x256xf32>
    %2 = tpu.matmul %1, %0, %cst {dimension_numbers = #tpu.dot_dimension_numbers<[1], [0], [0], [1], [0, 0, 1, 1], [], []>} : vector<24x4xf32>, vector<4x256xf32>, vector<24x256xf32> -> vector<24x256xf32>
    %c0_3 = arith.constant 0 : index
    %c0_4 = arith.constant 0 : index
    %3 = vector.load %arg3[%c0_3, %c0_4] : memref<24x1xf32, #tpu.memory_space<vmem>>, vector<24x1xf32>
    %4 = vector.broadcast %3 : vector<24x1xf32> to vector<24x256xf32>
    %5 = arith.addf %2, %4 : vector<24x256xf32>
    %cst_5 = arith.constant 3.000000e+00 : f32
    %6 = vector.broadcast %cst_5 : f32 to vector<24x256xf32>
    %7 = arith.addf %5, %6 : vector<24x256xf32>
    %cst_6 = arith.constant 0.000000e+00 : f32
    %cst_7 = arith.constant 6.000000e+00 : f32
    %8 = vector.broadcast %cst_6 : f32 to vector<24x256xf32>
    %9 = arith.maximumf %8, %7 : vector<24x256xf32>
    %10 = vector.broadcast %cst_7 : f32 to vector<24x256xf32>
    %11 = arith.minimumf %10, %9 : vector<24x256xf32>
    %12 = arith.mulf %5, %11 : vector<24x256xf32>
    %c0_8 = arith.constant 0 : index
    %c0_9 = arith.constant 0 : index
    %13 = vector.load %arg4[%c0_8, %c0_9] : memref<24x9xf32, #tpu.memory_space<vmem>>, vector<24x9xf32>
    %c0_10 = arith.constant 0 : index
    %c0_11 = arith.constant 0 : index
    %14 = vector.load %arg8[%c0_10, %c0_11] : memref<4x256xf32, #tpu.memory_space<vmem>>, vector<4x256xf32>
    %c1_i32 = arith.constant 1 : i32
    %15 = tpu.dynamic_rotate %12 by %c1_i32 dim 1 : vector<24x256xf32>, i32 -> vector<24x256xf32>
    %16 = vector.extract_strided_slice %14 {offsets = [0, 0], sizes = [1, 256], strides = [1, 1]} : vector<4x256xf32> to vector<1x256xf32>
    %17 = vector.broadcast %16 : vector<1x256xf32> to vector<24x256xf32>
    %18 = arith.mulf %15, %17 : vector<24x256xf32>
    %c255_i32 = arith.constant 255 : i32
    %19 = tpu.dynamic_rotate %12 by %c255_i32 dim 1 : vector<24x256xf32>, i32 -> vector<24x256xf32>
    %20 = vector.extract_strided_slice %14 {offsets = [1, 0], sizes = [1, 256], strides = [1, 1]} : vector<4x256xf32> to vector<1x256xf32>
    %21 = vector.broadcast %20 : vector<1x256xf32> to vector<24x256xf32>
    %22 = arith.mulf %19, %21 : vector<24x256xf32>
    %23 = vector.extract_strided_slice %13 {offsets = [0, 0], sizes = [24, 1], strides = [1, 1]} : vector<24x9xf32> to vector<24x1xf32>
    %24 = vector.broadcast %23 : vector<24x1xf32> to vector<24x256xf32>
    %25 = arith.mulf %18, %24 : vector<24x256xf32>
    %26 = vector.extract_strided_slice %13 {offsets = [0, 1], sizes = [24, 1], strides = [1, 1]} : vector<24x9xf32> to vector<24x1xf32>
    %27 = vector.broadcast %26 : vector<24x1xf32> to vector<24x256xf32>
    %28 = arith.mulf %12, %27 : vector<24x256xf32>
    %29 = arith.addf %25, %28 : vector<24x256xf32>
    %30 = vector.extract_strided_slice %13 {offsets = [0, 2], sizes = [24, 1], strides = [1, 1]} : vector<24x9xf32> to vector<24x1xf32>
    %31 = vector.broadcast %30 : vector<24x1xf32> to vector<24x256xf32>
    %32 = arith.mulf %22, %31 : vector<24x256xf32>
    %33 = arith.addf %29, %32 : vector<24x256xf32>
    %c16_i32 = arith.constant 16 : i32
    %34 = tpu.dynamic_rotate %33 by %c16_i32 dim 1 : vector<24x256xf32>, i32 -> vector<24x256xf32>
    %35 = vector.extract_strided_slice %14 {offsets = [2, 0], sizes = [1, 256], strides = [1, 1]} : vector<4x256xf32> to vector<1x256xf32>
    %36 = vector.broadcast %35 : vector<1x256xf32> to vector<24x256xf32>
    %37 = arith.mulf %34, %36 : vector<24x256xf32>
    %38 = vector.extract_strided_slice %13 {offsets = [0, 3], sizes = [24, 1], strides = [1, 1]} : vector<24x9xf32> to vector<24x1xf32>
    %39 = vector.broadcast %38 : vector<24x1xf32> to vector<24x256xf32>
    %40 = arith.mulf %18, %39 : vector<24x256xf32>
    %41 = vector.extract_strided_slice %13 {offsets = [0, 4], sizes = [24, 1], strides = [1, 1]} : vector<24x9xf32> to vector<24x1xf32>
    %42 = vector.broadcast %41 : vector<24x1xf32> to vector<24x256xf32>
    %43 = arith.mulf %12, %42 : vector<24x256xf32>
    %44 = arith.addf %40, %43 : vector<24x256xf32>
    %45 = vector.extract_strided_slice %13 {offsets = [0, 5], sizes = [24, 1], strides = [1, 1]} : vector<24x9xf32> to vector<24x1xf32>
    %46 = vector.broadcast %45 : vector<24x1xf32> to vector<24x256xf32>
    %47 = arith.mulf %22, %46 : vector<24x256xf32>
    %48 = arith.addf %44, %47 : vector<24x256xf32>
    %49 = arith.addf %37, %48 : vector<24x256xf32>
    %50 = vector.extract_strided_slice %13 {offsets = [0, 6], sizes = [24, 1], strides = [1, 1]} : vector<24x9xf32> to vector<24x1xf32>
    %51 = vector.broadcast %50 : vector<24x1xf32> to vector<24x256xf32>
    %52 = arith.mulf %18, %51 : vector<24x256xf32>
    %53 = vector.extract_strided_slice %13 {offsets = [0, 7], sizes = [24, 1], strides = [1, 1]} : vector<24x9xf32> to vector<24x1xf32>
    %54 = vector.broadcast %53 : vector<24x1xf32> to vector<24x256xf32>
    %55 = arith.mulf %12, %54 : vector<24x256xf32>
    %56 = arith.addf %52, %55 : vector<24x256xf32>
    %57 = vector.extract_strided_slice %13 {offsets = [0, 8], sizes = [24, 1], strides = [1, 1]} : vector<24x9xf32> to vector<24x1xf32>
    %58 = vector.broadcast %57 : vector<24x1xf32> to vector<24x256xf32>
    %59 = arith.mulf %22, %58 : vector<24x256xf32>
    %60 = arith.addf %56, %59 : vector<24x256xf32>
    %c240_i32 = arith.constant 240 : i32
    %61 = tpu.dynamic_rotate %60 by %c240_i32 dim 1 : vector<24x256xf32>, i32 -> vector<24x256xf32>
    %62 = vector.extract_strided_slice %14 {offsets = [3, 0], sizes = [1, 256], strides = [1, 1]} : vector<4x256xf32> to vector<1x256xf32>
    %63 = vector.broadcast %62 : vector<1x256xf32> to vector<24x256xf32>
    %64 = arith.mulf %61, %63 : vector<24x256xf32>
    %65 = arith.addf %49, %64 : vector<24x256xf32>
    %c0_12 = arith.constant 0 : index
    %c0_13 = arith.constant 0 : index
    %66 = vector.load %arg5[%c0_12, %c0_13] : memref<24x1xf32, #tpu.memory_space<vmem>>, vector<24x1xf32>
    %67 = vector.broadcast %66 : vector<24x1xf32> to vector<24x256xf32>
    %68 = arith.addf %65, %67 : vector<24x256xf32>
    %cst_14 = arith.constant 3.000000e+00 : f32
    %69 = vector.broadcast %cst_14 : f32 to vector<24x256xf32>
    %70 = arith.addf %68, %69 : vector<24x256xf32>
    %cst_15 = arith.constant 0.000000e+00 : f32
    %cst_16 = arith.constant 6.000000e+00 : f32
    %71 = vector.broadcast %cst_15 : f32 to vector<24x256xf32>
    %72 = arith.maximumf %71, %70 : vector<24x256xf32>
    %73 = vector.broadcast %cst_16 : f32 to vector<24x256xf32>
    %74 = arith.minimumf %73, %72 : vector<24x256xf32>
    %75 = arith.mulf %68, %74 : vector<24x256xf32>
    %c0_17 = arith.constant 0 : index
    %c0_18 = arith.constant 0 : index
    %76 = vector.load %arg6[%c0_17, %c0_18] : memref<4x24xf32, #tpu.memory_space<vmem>>, vector<4x24xf32>
    %cst_19 = arith.constant dense<0.000000e+00> : vector<4x256xf32>
    %77 = tpu.matmul %76, %75, %cst_19 {dimension_numbers = #tpu.dot_dimension_numbers<[1], [0], [0], [1], [0, 0, 1, 1], [], []>} : vector<4x24xf32>, vector<24x256xf32>, vector<4x256xf32> -> vector<4x256xf32>
    %78 = arith.addf %0, %77 : vector<4x256xf32>
    %c0_20 = arith.constant 0 : index
    %c0_21 = arith.constant 0 : index
    %79 = vector.load %arg7[%c0_20, %c0_21] : memref<4x1xf32, #tpu.memory_space<vmem>>, vector<4x1xf32>
    %80 = vector.broadcast %79 : vector<4x1xf32> to vector<4x256xf32>
    %81 = arith.addf %78, %80 : vector<4x256xf32>
    %c0_22 = arith.constant 0 : index
    %c0_23 = arith.constant 0 : index
    %82 = vector.load %arg9[%c0_22, %c0_23] : memref<4x256xf32, #tpu.memory_space<vmem>>, vector<4x256xf32>
    tpu.vector_store %arg9[%c0_22, %c0_23], %81 {strides = array<i32>} : memref<4x256xf32, #tpu.memory_space<vmem>>, vector<4x256xf32>,
    return
  }
  func.func @transform_0(%arg0: i32) -> (i32, i32) {
    %c0_i32 = arith.constant 0 : i32
    %c0_i32_0 = arith.constant 0 : i32
    return %c0_i32, %arg0 : i32, i32
  }
  func.func @transform_1(%arg0: i32) -> (i32, i32) {
    %c0_i32 = arith.constant 0 : i32
    %c0_i32_0 = arith.constant 0 : i32
    %c0_i32_1 = arith.constant 0 : i32
    return %c0_i32, %c0_i32_0 : i32, i32
  }
  func.func @transform_2(%arg0: i32) -> (i32, i32) {
    %c0_i32 = arith.constant 0 : i32
    %c0_i32_0 = arith.constant 0 : i32
    %c0_i32_1 = arith.constant 0 : i32
    return %c0_i32, %c0_i32_0 : i32, i32
  }
  func.func @transform_3(%arg0: i32) -> (i32, i32) {
    %c0_i32 = arith.constant 0 : i32
    %c0_i32_0 = arith.constant 0 : i32
    %c0_i32_1 = arith.constant 0 : i32
    return %c0_i32, %c0_i32_0 : i32, i32
  }
  func.func @transform_4(%arg0: i32) -> (i32, i32) {
    %c0_i32 = arith.constant 0 : i32
    %c0_i32_0 = arith.constant 0 : i32
    %c0_i32_1 = arith.constant 0 : i32
    return %c0_i32, %c0_i32_0 : i32, i32
  }
  func.func @transform_5(%arg0: i32) -> (i32, i32) {
    %c0_i32 = arith.constant 0 : i32
    %c0_i32_0 = arith.constant 0 : i32
    %c0_i32_1 = arith.constant 0 : i32
    return %c0_i32, %c0_i32_0 : i32, i32
  }
  func.func @transform_6(%arg0: i32) -> (i32, i32) {
    %c0_i32 = arith.constant 0 : i32
    %c0_i32_0 = arith.constant 0 : i32
    %c0_i32_1 = arith.constant 0 : i32
    return %c0_i32, %c0_i32_0 : i32, i32
  }
  func.func @transform_7(%arg0: i32) -> (i32, i32) {
    %c0_i32 = arith.constant 0 : i32
    %c0_i32_0 = arith.constant 0 : i32
    %c0_i32_1 = arith.constant 0 : i32
    return %c0_i32, %c0_i32_0 : i32, i32
  }
  func.func @transform_8(%arg0: i32) -> (i32, i32) {
    %c0_i32 = arith.constant 0 : i32
    %c0_i32_0 = arith.constant 0 : i32
    return %c0_i32, %arg0 : i32, i32
  }
}

</mosaic_0001>

<bundles_post_ra>
// kernel: tpu_custom_call.1
= control target key start
LH: loop header
LB: loop body
LE: loop exit
PB: predicated region body
PF: predicated region fallthrough
CT: control target
= control target key end

     0   :  { %13 = vsyncpa [#allocation3], 0  ;;  %s1751_s0 = inlined_call_operand.vmem [shape: f32[4,512], index: 0, kind: input, shape index: {}]   ;;  %s1752_s1 = inlined_call_operand.vmem [shape: f32[24,4], index: 1, kind: input, shape index: {}]   ;;  %s1753_s2 = inlined_call_operand.vmem [shape: f32[24,1], index: 2, kind: input, shape index: {}]   ;;  %s1754_s3 = inlined_call_operand.vmem [shape: f32[24,9], index: 3, kind: input, shape index: {}]   ;;  %s1755_s4 = inlined_call_operand.vmem [shape: f32[24,1], index: 4, kind: input, shape index: {}]   ;;  %s1756_s5 = inlined_call_operand.vmem [shape: f32[4,24], index: 5, kind: input, shape index: {}]   ;;  %s1757_s6 = inlined_call_operand.vmem [shape: f32[4,1], index: 6, kind: input, shape index: {}]   ;;  %s1758_s7 = inlined_call_operand.vmem [shape: f32[4,256], index: 7, kind: input, shape index: {}]   ;;  %s1759_s8 = inlined_call_operand.hbm [shape: f32[4,512], index: 8, kind: output, shape index: {}]  }
   0x1   :  { %15 = vsyncpa [#allocation3 + $0x1], 0  ;;  %s1289_s27 = smov 0   ;;  %s1291_s28 = smov 0  }
   0x2   :  { %s1293_s29 = smov 0   ;;  %s1295_s30 = smov 0  }
   0x3 LB: > { %s1310_s9 = sadd.s32 4294967295, %s1226_s30   ;;  %s1063_s10 = sadd.s32 4294967294, %s1226_s30   ;;  %s1226_s30 = sphi %s1295_s30, %s1765_s30   ;;  %s1222_s29 = sphi %s1293_s29, %s1764_s29   ;;  %s1218_s28 = sphi %s1291_s28, %s1763_s28   ;;  %s1214_s27 = sphi %s1289_s27, %s1762_s27  }
   0x4   : > { %s1314_s11 = sadd.s32 1, %s1226_s30   ;;  %s201_s12 = sadd.s32 1, %s1222_s29 }
   0x5   : > { %s198_s13 = ssub.s32 %s1226_s30, %s1314_s11  ;;  %p211_p0 = scmp.ne.s32.totalorder %s1222_s29, %s1218_s28 }
   0x6   : > { %p199_p1 = scmp.eq.s32.totalorder %s198_s13, 0  ;;  %p212_p2 = scmp.eq.s32.totalorder %s1310_s9, 1 }
   0x7   : > { %p217_p3 = scmp.ne.s32.totalorder %s1218_s28, %s1214_s27  ;;  %p218_p4 = scmp.eq.s32.totalorder %s1063_s10, 1 }
   0x8   : > { %s1325_s14 = scalar_select %p199_p1, %s1222_s29, %s201_s12  }
   0x9   : > { %p1327_p5 = por %p212_p2, %p211_p0  ;;  %p1331_p6 = por %p218_p4, %p217_p3 }
   0xa   : > { %p1066_p7 = scmp.ge.s32.totalorder %s1226_s30, 1  ;;  %p266_p8 = scmp.lt.s32.totalorder %s1226_s30, 3 }
   0xc   : > { %p267_p9 = pnand %p1066_p7, %p266_p8 }
   0xd   : > { %s1068_s17 = sshll.u32 (!%p267_p9), %s1310_s9, 1  ;;  %v1228_v0 = vmov (!%p267_p9), 0.0   ;;  %v313_v1 = vld [vmem:[%s1753_s2 + $0x10] sm:$0xff] (!%p267_p9)  ;;  %v1229_v2 = vmov (!%p267_p9), 0   ;;  %v311_v3 = vld [vmem:[%s1753_s2] sm:$0xff] (!%p267_p9)  ;;  %v312_v5 = vld [vmem:[%s1753_s2 + $0x8] sm:$0xff] (!%p267_p9) }
   0xe   : > { %270 = sbr.rel (%p267_p9) target bundleno = 774 (0x306), region = 52  ;;  %p301_p10 = scmp.lt.s32.totalorder (!%p267_p9), %s1068_s17, 3  ;;  %410 = vmatprep.mubr.f32.mxu0 (!%p267_p9), %v1228_v0  ;;  %962 = vmatprep.mubr.f32.mxu1 (!%p267_p9), %v1228_v0  ;;  %v1349_v4 = vld [vmem:[%s1754_s3] sm:$0xff] (!%p267_p9)  ;;  %vm341_vm0 = vcmask (!%p267_p9), 1043456   ;;  %vm331_vm1 = vcmask (!%p267_p9), 31744   ;;  %v1368_v9 = vld [vmem:[%s1754_s3 + $0x8] sm:$0xff] (!%p267_p9) }
   0xf   : > { %1141 = vset.pattern.permute.xlu1 (!%p267_p9), %v1229_v2  ;;  %1140 = vset.pattern.permute.xlu0 (!%p267_p9), %v1229_v2  ;;  %v308_v8 = vld [vmem:[%s1752_s1] sm:$0xff] (!%p267_p9)  ;;  %v1230_v10 = vmov (!%p267_p9), 1   ;;  %v309_v11 = vld [vmem:[%s1752_s1 + $0x8] sm:$0xff] (!%p267_p9)  ;;  %v1231_v12 = vmov (!%p267_p9), 2   ;;  %v310_v13 = vld [vmem:[%s1752_s1 + $0x10] sm:$0xff] (!%p267_p9)  ;;  %v1232_v14 = vmov (!%p267_p9), 6  }
  0x10   : > { %326 = vperm.xlu1 (!%p267_p9), %1141, %v313_v1   ;;  %316 = vperm.xlu0 (!%p267_p9), %1140, %v311_v3   ;;  %v1389_v15 = vld [vmem:[%s1754_s3 + $0x10] sm:$0xff] (!%p267_p9)  ;;  %v1233_v16 = vmov (!%p267_p9), 7   ;;  %v1234_v17 = vmov (!%p267_p9), 8   ;;  %v1235_v18 = vmov (!%p267_p9), 3   ;;  %s1236_s10 = smov (!%p267_p9), 1   ;;  %s1237_s12 = smov (!%p267_p9), 127  }
  0x11   : > { %v1238_v54 = vmov (!%p267_p9), 4   ;;  %v845_v59 = vld [vmem:[%s1755_s4] sm:$0xff] (!%p267_p9)  ;;  %v1239_v60 = vmov (!%p267_p9), 5   ;;  %v846_v63 = vld [vmem:[%s1755_s4 + $0x8] sm:$0xff] (!%p267_p9)  ;;  %s1240_s24 = smov (!%p267_p9), 112   ;;  %s1241_s25 = smov (!%p267_p9), 16  }
  0x12   : > { %vm894_vm6 = vcmask (!%p267_p9), 195584   ;;  %s297_s18 = sand.u32 (!%p267_p9), 1, %s1218_s28  }
  0x13   : > { %s1067_s19 = sshll.u32 (!%p267_p9), %s297_s18, 3 }
  0x14   : > { %548 = vperm.xlu1 (!%p267_p9), %1141, %v1349_v4   ;;  %321 = vperm.xlu0 (!%p267_p9), %1140, %v312_v5   ;;  %s299_s20 = scalar_lea.vmem (!%p267_p9), [#allocation2], %s1067_s19 }
  0x15   : > { %s1767_s17 = smov (!%p301_p10, %s1068_s17), 3  ;;  %s1004_s21 = sshll.u32 %s299_s20, 4  ;;  %s1711_s21 = int_to_ptr.vmem [resolvable:$true] %s1004_s21 }
  0x16   : > { %s1069_s26 = sshll.u32 %s1767_s17, 2  ;;  %s1081_s17 = sshll.u32 %s1310_s9, 7 }
  0x17   : > { %s304_s13 = scalar_lea.vmem %s1751_s0, %s1069_s26  ;;  %s1164_s26 = scalar_lea.vmem %s1711_s21, 128 }
  0x18   : > { %v1357_v6 = vld [vmem:[%s304_s13] sm:$0xff]  ;;  %1142 = vset.pattern.permute.xlu1 %v1230_v10  ;;  %553 = vperm.xlu0 %1140, %v1368_v9   ;;  %p1165_p11 = scmp.ne.s32.totalorder %s1711_s21, %s1164_s26  ;;  %s1243_s9 = smov [#allocation2]  }
  0x19   : > { %v330_v7 = vcombine.high %v1357_v6, %v1357_v6  ;;  %568 = vperm.xlu1 %1142, %v1349_v4  }
  0x1a   : > { %p1166_p12 = pnand %p1165_p11, %p1327_p5 }
  0x1b   : > { %1070 = vmatprep.subr.msk.mxu0 %vm341_vm0, %v330_v7 }
  0x1c   : > { %1071 = vmatpush1.msk.msra.mxu0 %vm341_vm0, %v1357_v6  ;;  %1144 = vset.pattern.permute.xlu0 %v1232_v14  ;;  %p1167_p13 = pneg %p1166_p12 }
  0x1d   : > { %1072 = vmatmul.mubr.msk.f32.vlgmr.msra.gmra.mrb[0].mxu0 %vm331_vm1, %v308_v8  ;;  %1143 = vset.pattern.permute.xlu1 %v1231_v12 }
  0x1e   : > { %416 = vmatprep.mubr.f32.mxu0 %v1228_v0  ;;  %592 = vperm.xlu1 %1143, %v1349_v4  }
  0x1f   : > { %731 = vperm.xlu0 %1144, %v1349_v4  }
  0x21   : > { %1073 = vmatmul.mubr.msk.f32.gmra.mrb[2].mxu0 %vm331_vm1, %v309_v11 }
  0x22   : > { %422 = vmatprep.mubr.f32.mxu0 %v1228_v0  ;;  %596 = vperm.xlu1 %1143, %v1368_v9   ;;  %v847_v0 = vld [vmem:[%s1755_s4 + $0x10] sm:$0xff] }
  0x23   : > { %1145 = vset.pattern.permute.xlu0 %v1230_v10 }
  0x24   : > { %572 = vperm.xlu0 %1145, %v1368_v9  }
  0x25   : > { %1074 = vmatmul.mubr.msk.f32.gmra.mrb[4].mxu0 %vm331_vm1, %v310_v13 }
  0x26   : > { %1146 = vset.pattern.permute.xlu1 %v1232_v14 }
  0x27   : > { %735 = vperm.xlu1 %1146, %v1368_v9  }
  0x28   : > { %576 = vperm.xlu0 %1145, %v1389_v15  }
  0x2b   : > { %1147 = vset.pattern.permute.xlu1 %v1233_v16 }
  0x2c   : > { %749 = vperm.xlu1 %1147, %v1349_v4   ;;  %1150 = vset.pattern.permute.xlu0 %v1233_v16 }
  0x2d   : > { %753 = vperm.xlu0 %1150, %v1368_v9  }
  0x30   : > { %1148 = vset.pattern.permute.xlu1 %v1234_v17 }
  0x31   : > { %777 = vperm.xlu1 %1148, %v1368_v9   ;;  %757 = vperm.xlu0 %1150, %v1389_v15  }
  0x35   : > { %1149 = vset.pattern.permute.xlu1 %v1229_v2  ;;  %1153 = vset.pattern.permute.xlu0 %v1234_v17 }
  0x36   : > { %558 = vperm.xlu1 %1149, %v1389_v15   ;;  %773 = vperm.xlu0 %1153, %v1349_v4  }
  0x3a   : > { %1151 = vset.pattern.permute.xlu1 %v1231_v12  ;;  %v469_v12 = vlaneseq }
  0x3b   : > { %600 = vperm.xlu1 %1151, %v1389_v15  }
  0x3f   : > { %1152 = vset.pattern.permute.xlu1 %v1232_v14 }
  0x40   : > { %739 = vperm.xlu1 %1152, %v1389_v15  }
  0x44   : > { %1154 = vset.pattern.permute.xlu1 %v1235_v18 }
  0x8f   : > { %v317_v19 = vpop.permute.xlu0 %316  ;;  %v327_v44 = vpop.permute.xlu1 %326 }
  0x93   : > { %v322_v25 = vpop.permute.xlu0 %321  ;;  %v1445_v61 = vpop.permute.xlu1 %548 }
  0x98   : > { %v1448_v62 = vpop.permute.xlu1 %568 }
  0x9d   : > { %v1457_v1 = vpop.permute.xlu1 %592 }
  0xa1   : > { %v1459_v3 = vpop.permute.xlu1 %596 }
  0xa6   : > { %v1463_v5 = vpop.permute.xlu1 %735 }
  0xab   : > { %v750_v8 = vpop.permute.xlu1 %749 }
  0xb0   : > { %v1467_v10 = vpop.permute.xlu1 %777 }
  0xb5   : > { %v1471_v11 = vpop.permute.xlu1 %558 }
  0xba   : > { %v1475_v14 = vpop.permute.xlu1 %600 }
  0xf0   : > { %v412_v20 = vpop.f32.mrb[0].mxu0 }
  0xf1   : > { %v413_v21 = vadd.f32 %v412_v20, %v317_v19  ;;  %v414_v22 = vpop.f32.mrb[1].mxu0 }
  0xf2   : > { %v415_v23 = vadd.f32 %v414_v22, %v317_v19  ;;  %v1487_v19 = vpop.permute.xlu1 %739 }
  0xf3   : > { %v429_v24 = vadd.f32 3.0, %v413_v21 }
  0xf4   : > { %v430_v26 = vadd.f32 3.0, %v415_v23  ;;  %v418_v27 = vpop.f32.mrb[2].mxu0 }
  0xf5   : > { %v435_v28 = vmax.f32 %v429_v24, 0.0  ;;  %v419_v29 = vadd.f32 %v418_v27, %v322_v25  ;;  %v420_v30 = vpop.f32.mrb[3].mxu0 }
  0xf6   : > { %v436_v31 = vmax.f32 %v430_v26, 0.0  ;;  %v421_v32 = vadd.f32 %v420_v30, %v322_v25 }
  0xf7   : > { %v441_v33 = vmin.f32 %v435_v28, 6.0  ;;  %v431_v34 = vadd.f32 3.0, %v419_v29 }
  0xf8   : > { %v442_v35 = vmin.f32 %v436_v31, 6.0  ;;  %v432_v36 = vadd.f32 3.0, %v421_v32  ;;  %v424_v37 = vpop.f32.mrb[4].mxu0 }
  0xf9   : > { %v1402_v38 = vmul.f32 %v441_v33, %v413_v21  ;;  %v437_v39 = vmax.f32 %v431_v34, 0.0  ;;  %v426_v40 = vpop.f32.mrb[5].mxu0  ;;  %v425_v46 = vadd.f32 %v424_v37, %v327_v44  ;;  %v1489_v21 = vand.u32 127, %v469_v12 }
  0xfa   : > { %v1404_v41 = vmul.f32 %v442_v35, %v415_v23  ;;  %v438_v42 = vmax.f32 %v432_v36, 0.0  ;;  %v427_v51 = vadd.f32 %v426_v40, %v327_v44 }
  0xfb   : > { %v443_v43 = vmin.f32 %v437_v39, 6.0  ;;  %457 = vrot.lane.b32.xlu1 %v1402_v38, %s1236_s10  ;;  %v433_v48 = vadd.f32 3.0, %v425_v46  ;;  %vm471_vm2 = vcmp.lt.s32.totalorder %v1489_v21, 1  ;;  %vm515_vm3 = vcmp.lt.s32.totalorder %v1489_v21, 127 }
  0xfc   : > { %463 = vrot.lane.b32.xlu0 %v1404_v41, %s1236_s10  ;;  %v444_v47 = vmin.f32 %v438_v42, 6.0  ;;  %v434_v53 = vadd.f32 3.0, %v427_v51  ;;  %vm808_vm4 = vcmp.lt.s32.totalorder %v1489_v21, 112  ;;  %vm627_vm5 = vcmp.lt.s32.totalorder %v1489_v21, 16 }
  0xfd   : > { %v1410_v45 = vmul.f32 %v443_v43, %v419_v29  ;;  %v439_v50 = vmax.f32 %v433_v48, 0.0 }
  0xfe   : > { %v1414_v49 = vmul.f32 %v444_v47, %v421_v32  ;;  %v440_v56 = vmax.f32 %v434_v53, 0.0  ;;  %v579_v53 = vmul.f32 %v1448_v62, %v1402_v38 }
  0xff   : > { %503 = vrot.lane.b32.xlu1 %v1402_v38, %s1237_s12  ;;  %v445_v52 = vmin.f32 %v439_v50, 6.0  ;;  %v760_v50 = vmul.f32 %v750_v8, %v1402_v38 }
 0x100   : > { %505 = vrot.lane.b32.xlu0 %v1410_v45, %s1237_s12  ;;  %v446_v57 = vmin.f32 %v440_v56, 6.0 }
 0x101   : > { %v1423_v55 = vmul.f32 %v445_v52, %v425_v46 }
 0x102   : > { %v1430_v58 = vmul.f32 %v446_v57, %v427_v51 }
 0x103   : > { %509 = vrot.lane.b32.xlu1 %v1404_v41, %s1237_s12 }
 0x104   : > { %511 = vrot.lane.b32.xlu0 %v1414_v49, %s1237_s12 }
 0x107   : > { %459 = vrot.lane.b32.xlu1 %v1410_v45, %s1236_s10 }
 0x108   : > { %781 = vperm.xlu0 %1153, %v1389_v15  }
 0x10b   : > { %465 = vrot.lane.b32.xlu1 %v1414_v49, %s1236_s10 }
 0x10c   : > { %1156 = vset.pattern.permute.xlu0 %v1238_v54 }
 0x10d   : > { %681 = vperm.xlu0 %1156, %v1368_v9  }
 0x10f   : > { %461 = vrot.lane.b32.xlu1 %v1423_v55, %s1236_s10 }
 0x111   : > { %1157 = vset.pattern.permute.xlu0 %v1235_v18  ;;  %v1485_v18 = vld [vmem:[%s1758_s7] sm:$0xff] }
 0x112   : > { %659 = vperm.xlu0 %1157, %v1349_v4  }
 0x113   : > { %507 = vrot.lane.b32.xlu1 %v1423_v55, %s1237_s12 }
 0x116   : > { %667 = vperm.xlu0 %1157, %v1389_v15  }
 0x117   : > { %467 = vrot.lane.b32.xlu1 %v1430_v58, %s1236_s10  ;;  %s1168_s10 = sshll.u32 %s1243_s9, 4  ;;  %s1169_s10 = int_to_ptr.vmem [resolvable:$false] %s1168_s10 }
 0x118   : > { %p1171_p0 = scmp.lt.s32.totalorder %s1711_s21, %s1169_s10 }
 0x11a   : > { %1161 = vset.pattern.permute.xlu0 %v1229_v2 }
 0x11b   : > { %513 = vrot.lane.b32.xlu1 %v1430_v58, %s1237_s12  ;;  %850 = vperm.xlu0 %1161, %v845_v59   ;;  %s1170_s12 = scalar_lea.vmem %s1169_s10, 256 }
 0x11c   : > { %p1172_p1 = scmp.lt.s32.totalorder %s1170_s12, %s1164_s26 }
 0x11e   : > { %p1173_p2 = por %p1172_p1, %p1171_p0 }
 0x11f   : > { %663 = vperm.xlu1 %1154, %v1368_v9  }
 0x120   : > { %p1174_p3 = pnand %p1173_p2, %p1167_p13 }
 0x123   : > { %1155 = vset.pattern.permute.xlu1 %v1238_v54 }
 0x124   : > { %677 = vperm.xlu1 %1155, %v1349_v4  }
 0x128   : > { %1158 = vset.pattern.permute.xlu1 %v1239_v60 }
 0x129   : > { %701 = vperm.xlu1 %1158, %v1349_v4   ;;  %v1461_v4 = vpop.permute.xlu0 %553 }
 0x12d   : > { %705 = vperm.xlu1 %1158, %v1368_v9   ;;  %v732_v7 = vpop.permute.xlu0 %731 }
 0x131   : > { %1159 = vset.pattern.permute.xlu1 %v1238_v54  ;;  %v1465_v9 = vpop.permute.xlu0 %572 }
 0x132   : > { %685 = vperm.xlu1 %1159, %v1389_v15  }
 0x136   : > { %1160 = vset.pattern.permute.xlu1 %v1239_v60 }
 0x137   : > { %709 = vperm.xlu1 %1160, %v1389_v15   ;;  %v1477_v15 = vshrl.u32 %v469_v12, 7 }
 0x139   : > { %v481_v17 = vsub.s32 0, %v1477_v15  ;;  %v485_v22 = vsub.s32 4, %v1477_v15  ;;  %v524_v24 = vsub.s32 1, %v1477_v15  ;;  %v528_v25 = vsub.s32 5, %v1477_v15 }
 0x13b   : > { %1162 = vset.pattern.permute.xlu1 %v1229_v2  ;;  %v1469_v2 = vpop.permute.xlu0 %576  ;;  %v482_v23 = vrot.slane %v1485_v18, %v481_v17  ;;  %v486_v26 = vrot.slane %v1485_v18, %v485_v22  ;;  %v525_v31 = vrot.slane %v1485_v18, %v524_v24  ;;  %v529_v32 = vrot.slane %v1485_v18, %v528_v25 }
 0x13c   : > { %855 = vperm.xlu1 %1162, %v846_v63   ;;  %v580_v25 = vmul.f32 %v1448_v62, %v1404_v41 }
 0x13d   : > { %v1497_v28 = vrot.slane %v482_v23, %v481_v17  ;;  %v1503_v33 = vrot.slane %v486_v26, %v481_v17  ;;  %v1511_v39 = vrot.slane %v525_v31, %v524_v24  ;;  %v1513_v40 = vrot.slane %v529_v32, %v524_v24 }
 0x13e   : > { %v761_v17 = vmul.f32 %v750_v8, %v1404_v41 }
 0x13f   : > { %v1473_v13 = vpop.permute.xlu0 %753 }
 0x140   : > { %860 = vperm.xlu1 %1162, %v847_v0  }
 0x143   : > { %v1479_v16 = vpop.permute.xlu0 %757 }
 0x147   : > { %v774_v20 = vpop.permute.xlu0 %773 }
 0x16d   : > { %v458_v27 = vpop.permute.xlu1 %457 }
 0x16e   : > { %v464_v29 = vpop.permute.xlu0 %463 }
 0x16f   : > { %v475_v30 = vsel %vm471_vm2, %v464_v29, %v458_v27  ;;  %v472_v34 = vsel %vm471_vm2, %v458_v27, %v464_v29 }
 0x170   : > { %v1508_v35 = vmul.f32 %v1497_v28, %v475_v30  ;;  %v1516_v42 = vmul.f32 %v1503_v33, %v472_v34  ;;  %v581_v34 = vmul.f32 %v1465_v9, %v1410_v45 }
 0x171   : > { %v504_v36 = vpop.permute.xlu1 %503 }
 0x172   : > { %v506_v37 = vpop.permute.xlu0 %505  ;;  %v561_v43 = vmul.f32 %v1445_v61, %v1508_v35  ;;  %v742_v44 = vmul.f32 %v732_v7, %v1508_v35  ;;  %v743_v54 = vmul.f32 %v732_v7, %v1516_v42  ;;  %v562_v12 = vmul.f32 %v1445_v61, %v1516_v42 }
 0x174   : > { %v766_v59 = vadd.f32 %v760_v50, %v742_v44  ;;  %v585_v63 = vadd.f32 %v579_v53, %v561_v43  ;;  %v767_v61 = vadd.f32 %v761_v17, %v743_v54  ;;  %v586_v29 = vadd.f32 %v580_v25, %v562_v12 }
 0x175   : > { %v510_v46 = vpop.permute.xlu1 %509  ;;  %v582_v50 = vmul.f32 %v1465_v9, %v1414_v49  ;;  %v763_v53 = vmul.f32 %v1473_v13, %v1414_v49 }
 0x176   : > { %v516_v47 = vsel %vm515_vm3, %v504_v36, %v510_v46  ;;  %v519_v48 = vsel %vm515_vm3, %v510_v46, %v504_v36  ;;  %v512_v56 = vpop.permute.xlu0 %511  ;;  %v762_v36 = vmul.f32 %v1473_v13, %v1410_v45 }
 0x177   : > { %v1527_v51 = vmul.f32 %v1511_v39, %v516_v47  ;;  %v1530_v52 = vmul.f32 %v1513_v40, %v519_v48  ;;  %v517_v7 = vsel %vm515_vm3, %v506_v37, %v512_v56  ;;  %v520_v8 = vsel %vm515_vm3, %v512_v56, %v506_v37 }
 0x178   : > { %v1583_v54 = vmul.f32 %v1513_v40, %v520_v8 }
 0x179   : > { %v460_v57 = vpop.permute.xlu1 %459  ;;  %v784_v60 = vmul.f32 %v774_v20, %v1527_v51  ;;  %v603_v0 = vmul.f32 %v1457_v1, %v1527_v51  ;;  %v785_v24 = vmul.f32 %v774_v20, %v1530_v52  ;;  %v604_v26 = vmul.f32 %v1457_v1, %v1530_v52 }
 0x17a   : > { %v1557_v1 = vmul.f32 %v1511_v39, %v517_v7  ;;  %v606_v13 = vmul.f32 %v1459_v3, %v1583_v54  ;;  %v787_v12 = vmul.f32 %v1467_v10, %v1583_v54 }
 0x17b   : > { %v790_v22 = vadd.f32 %v784_v60, %v766_v59  ;;  %v609_v23 = vadd.f32 %v603_v0, %v585_v63  ;;  %v791_v32 = vadd.f32 %v785_v24, %v767_v61  ;;  %v610_v37 = vadd.f32 %v604_v26, %v586_v29 }
 0x17c   : > { %v605_v56 = vmul.f32 %v1459_v3, %v1557_v1 }
 0x17d   : > { %v466_v27 = vpop.permute.xlu1 %465  ;;  %796 = vrot.lane.b32.xlu1 %v790_v22, %s1240_s24  ;;  %615 = vrot.lane.b32.xlu0 %v609_v23, %s1241_s25 }
 0x17e   : > { %v473_v20 = vsel %vm471_vm2, %v460_v57, %v466_v27  ;;  %v476_v62 = vsel %vm471_vm2, %v466_v27, %v460_v57 }
 0x17f   : > { %v1560_v30 = vmul.f32 %v1497_v28, %v476_v62  ;;  %v1563_v31 = vmul.f32 %v1503_v33, %v473_v20  ;;  %v583_v20 = vmul.f32 %v1469_v2, %v1423_v55  ;;  %v584_v62 = vmul.f32 %v1469_v2, %v1430_v58 }
 0x181   : > { %v563_v43 = vmul.f32 %v1461_v4, %v1560_v30  ;;  %v564_v44 = vmul.f32 %v1461_v4, %v1563_v31  ;;  %v744_v46 = vmul.f32 %v1463_v5, %v1560_v30  ;;  %v745_v47 = vmul.f32 %v1463_v5, %v1563_v31  ;;  %v462_v48 = vpop.permute.xlu1 %461  ;;  %802 = vrot.lane.b32.xlu1 %v791_v32, %s1240_s24 }
 0x182   : > { %621 = vrot.lane.b32.xlu0 %v610_v37, %s1241_s25  ;;  %v786_v5 = vmul.f32 %v1467_v10, %v1557_v1  ;;  %v765_v37 = vmul.f32 %v1479_v16, %v1430_v58 }
 0x183   : > { %v587_v4 = vadd.f32 %v581_v34, %v563_v43  ;;  %v768_v57 = vadd.f32 %v762_v36, %v744_v46  ;;  %v588_v9 = vadd.f32 %v582_v50, %v564_v44  ;;  %v769_v0 = vadd.f32 %v763_v53, %v745_v47 }
 0x185   : > { %v508_v59 = vpop.permute.xlu1 %507  ;;  %v611_v60 = vadd.f32 %v605_v56, %v587_v4  ;;  %v792_v63 = vadd.f32 %v786_v5, %v768_v57  ;;  %v612_v22 = vadd.f32 %v606_v13, %v588_v9  ;;  %v793_v23 = vadd.f32 %v787_v12, %v769_v0 }
 0x187   : > { %617 = vrot.lane.b32.xlu1 %v611_v60, %s1241_s25  ;;  %798 = vrot.lane.b32.xlu0 %v792_v63, %s1240_s24  ;;  %v782_v43 = vpop.permute.xlu0 %781 }
 0x189   : > { %v468_v17 = vpop.permute.xlu1 %467 }
 0x18a   : > { %v474_v24 = vsel %vm471_vm2, %v462_v48, %v468_v17  ;;  %v477_v7 = vsel %vm471_vm2, %v468_v17, %v462_v48 }
 0x18b   : > { %v1601_v25 = vmul.f32 %v1497_v28, %v477_v7  ;;  %v1604_v26 = vmul.f32 %v1503_v33, %v474_v24  ;;  %623 = vrot.lane.b32.xlu1 %v612_v22, %s1241_s25  ;;  %804 = vrot.lane.b32.xlu0 %v793_v23, %s1240_s24 }
 0x18d   : > { %v565_v3 = vmul.f32 %v1471_v11, %v1601_v25  ;;  %v566_v10 = vmul.f32 %v1471_v11, %v1604_v26  ;;  %v514_v27 = vpop.permute.xlu1 %513  ;;  %v746_v11 = vmul.f32 %v1487_v19, %v1601_v25  ;;  %v747_v29 = vmul.f32 %v1487_v19, %v1604_v26 }
 0x18e   : > { %v518_v61 = vsel %vm515_vm3, %v508_v59, %v514_v27  ;;  %v521_v28 = vsel %vm515_vm3, %v514_v27, %v508_v59 }
 0x18f   : > { %v544_v33 = vmul.f32 %v1511_v39, %v518_v61  ;;  %v545_v8 = vmul.f32 %v1513_v40, %v521_v28  ;;  %v589_v32 = vadd.f32 %v583_v20, %v565_v3  ;;  %v590_v36 = vadd.f32 %v584_v62, %v566_v10 }
 0x190   : > { %v764_v40 = vmul.f32 %v1479_v16, %v1423_v55  ;;  %v771_v19 = vadd.f32 %v765_v37, %v747_v29  ;;  %v682_v16 = vpop.permute.xlu0 %681 }
 0x191   : > { %v607_v34 = vmul.f32 %v1475_v14, %v544_v33  ;;  %v608_v39 = vmul.f32 %v1475_v14, %v545_v8  ;;  %v789_v46 = vmul.f32 %v782_v43, %v545_v8  ;;  %v788_v47 = vmul.f32 %v782_v43, %v544_v33  ;;  %v974_v14 = vld [vmem:[%s1757_s6] sm:$0xf] }
 0x192   : > { %v770_v48 = vadd.f32 %v764_v40, %v746_v11  ;;  %v690_v24 = vmul.f32 %v682_v16, %v1410_v45 }
 0x193   : > { %v613_v2 = vadd.f32 %v607_v34, %v589_v32  ;;  %v614_v44 = vadd.f32 %v608_v39, %v590_v36  ;;  %v795_v50 = vadd.f32 %v789_v46, %v771_v19 }
 0x194   : > { %v794_v53 = vadd.f32 %v788_v47, %v770_v48  ;;  %v660_v57 = vpop.permute.xlu0 %659 }
 0x195   : > { %619 = vrot.lane.b32.xlu1 %v613_v2, %s1241_s25  ;;  %625 = vrot.lane.b32.xlu0 %v614_v44, %s1241_s25  ;;  %v670_v60 = vmul.f32 %v660_v57, %v1508_v35  ;;  %v671_v63 = vmul.f32 %v660_v57, %v1516_v42  ;;  %s990_s25 = scalar_lea.sflag [#allocation3], %s297_s18 }
 0x198   : > { %v668_v28 = vpop.permute.xlu0 %667 }
 0x199   : > { %806 = vrot.lane.b32.xlu1 %v795_v50, %s1240_s24  ;;  %800 = vrot.lane.b32.xlu0 %v794_v53, %s1240_s24  ;;  %v674_v45 = vmul.f32 %v668_v28, %v1601_v25  ;;  %v817_v25 = vsub.s32 3, %v1477_v15  ;;  %s1709_s24 = scalar_lea.hbm %s1759_s8, %s1081_s17 }
 0x19b   : > { %v818_v43 = vrot.slane %v1485_v18, %v817_v25 }
 0x19c   : > { %v851_v36 = vpop.permute.xlu0 %850 }
 0x19d   : > { %977 = vperm.xlu0 %1161, %v974_v14   ;;  %v828_v19 = vrot.slane %v818_v43, %v817_v25 }
 0x19e   : > { %v664_v4 = vpop.permute.xlu1 %663 }
 0x19f   : > { %v672_v9 = vmul.f32 %v664_v4, %v1560_v30  ;;  %v673_v0 = vmul.f32 %v664_v4, %v1563_v31 }
 0x1a1   : > { %v696_v3 = vadd.f32 %v690_v24, %v672_v9 }
 0x1a3   : > { %v678_v56 = vpop.permute.xlu1 %677 }
 0x1a4   : > { %v688_v5 = vmul.f32 %v678_v56, %v1402_v38  ;;  %v689_v59 = vmul.f32 %v678_v56, %v1404_v41  ;;  %v691_v38 = vmul.f32 %v682_v16, %v1414_v49  ;;  %v675_v49 = vmul.f32 %v668_v28, %v1604_v26 }
 0x1a5   : > { %v821_v26 = vsub.s32 7, %v1477_v15 }
 0x1a6   : > { %v694_v12 = vadd.f32 %v688_v5, %v670_v60  ;;  %v695_v17 = vadd.f32 %v689_v59, %v671_v63  ;;  %v697_v42 = vadd.f32 %v691_v38, %v673_v0 }
 0x1a7   : > { %v822_v2 = vrot.slane %v1485_v18, %v821_v26 }
 0x1a8   : > { %v702_v13 = vpop.permute.xlu1 %701 }
 0x1a9   : > { %v712_v22 = vmul.f32 %v702_v13, %v1527_v51  ;;  %v713_v23 = vmul.f32 %v702_v13, %v1530_v52  ;;  %v832_v48 = vrot.slane %v822_v2, %v817_v25 }
 0x1ab   : > { %v718_v41 = vadd.f32 %v712_v22, %v694_v12  ;;  %v719_v7 = vadd.f32 %v713_v23, %v695_v17 }
 0x1ac   : > { %v706_v35 = vpop.permute.xlu1 %705 }
 0x1ad   : > { %v714_v30 = vmul.f32 %v706_v35, %v1557_v1  ;;  %v715_v31 = vmul.f32 %v706_v35, %v1583_v54 }
 0x1af   : > { %v720_v10 = vadd.f32 %v714_v30, %v696_v3  ;;  %v721_v27 = vadd.f32 %v715_v31, %v697_v42 }
 0x1b1   : > { %v686_v61 = vpop.permute.xlu1 %685 }
 0x1b2   : > { %v692_v51 = vmul.f32 %v686_v61, %v1423_v55  ;;  %v693_v52 = vmul.f32 %v686_v61, %v1430_v58  ;;  %v636_v55 = vsub.s32 2, %v1477_v15  ;;  %v640_v58 = vsub.s32 6, %v1477_v15 }
 0x1b4   : > { %v698_v62 = vadd.f32 %v692_v51, %v674_v45  ;;  %v699_v11 = vadd.f32 %v693_v52, %v675_v49  ;;  %v637_v40 = vrot.slane %v1485_v18, %v636_v55 }
 0x1b6   : > { %v710_v20 = vpop.permute.xlu1 %709  ;;  %v647_v44 = vrot.slane %v637_v40, %v636_v55 }
 0x1b7   : > { %v716_v29 = vmul.f32 %v710_v20, %v544_v33  ;;  %v717_v32 = vmul.f32 %v710_v20, %v545_v8  ;;  %v641_v33 = vrot.slane %v1485_v18, %v640_v58 }
 0x1b9   : > { %v1655_v1 = vadd.f32 %v716_v29, %v698_v62  ;;  %v1657_v54 = vadd.f32 %v717_v32, %v699_v11  ;;  %v651_v46 = vrot.slane %v641_v33, %v636_v55 }
 0x1bb   : > { %v856_v34 = vpop.permute.xlu1 %855 }
 0x1bf   : > { %v1659_v39 = vpop.permute.xlu1 %860 }
 0x1ef   : > { %v797_v8 = vpop.permute.xlu1 %796  ;;  %v616_v37 = vpop.permute.xlu0 %615 }
 0x1f3   : > { %v803_v47 = vpop.permute.xlu1 %802 }
 0x1f4   : > { %v622_v50 = vpop.permute.xlu0 %621  ;;  %v809_v53 = vsel %vm808_vm4, %v797_v8, %v803_v47  ;;  %v812_v14 = vsel %vm808_vm4, %v803_v47, %v797_v8 }
 0x1f5   : > { %v628_v16 = vsel %vm627_vm5, %v616_v37, %v622_v50  ;;  %v631_v18 = vsel %vm627_vm5, %v622_v50, %v616_v37  ;;  %v833_v57 = vmul.f32 %v828_v19, %v809_v53  ;;  %v834_v5 = vmul.f32 %v832_v48, %v812_v14 }
 0x1f6   : > { %v652_v4 = vmul.f32 %v647_v44, %v631_v18  ;;  %v653_v56 = vmul.f32 %v651_v46, %v628_v16 }
 0x1f8   : > { %v724_v59 = vadd.f32 %v718_v41, %v652_v4  ;;  %v725_v60 = vadd.f32 %v719_v7, %v653_v56 }
 0x1f9   : > { %v618_v63 = vpop.permute.xlu1 %617  ;;  %v799_v9 = vpop.permute.xlu0 %798 }
 0x1fa   : > { %v839_v0 = vadd.f32 %v833_v57, %v724_v59  ;;  %v840_v13 = vadd.f32 %v834_v5, %v725_v60 }
 0x1fc   : > { %v864_v12 = vadd.f32 %v851_v36, %v840_v13  ;;  %v863_v17 = vadd.f32 %v851_v36, %v839_v0 }
 0x1fd   : > { %v624_v22 = vpop.permute.xlu1 %623  ;;  %v805_v23 = vpop.permute.xlu0 %804 }
 0x1fe   : > { %v629_v24 = vsel %vm627_vm5, %v618_v63, %v624_v22  ;;  %v632_v38 = vsel %vm627_vm5, %v624_v22, %v618_v63  ;;  %v810_v35 = vsel %vm808_vm4, %v799_v9, %v805_v23  ;;  %v813_v41 = vsel %vm808_vm4, %v805_v23, %v799_v9 }
 0x1ff   : > { %v654_v7 = vmul.f32 %v647_v44, %v632_v38  ;;  %v655_v3 = vmul.f32 %v651_v46, %v629_v24  ;;  %v870_v42 = vadd.f32 3.0, %v864_v12  ;;  %v869_v30 = vadd.f32 3.0, %v863_v17 }
 0x200   : > { %v835_v28 = vmul.f32 %v828_v19, %v810_v35  ;;  %v836_v51 = vmul.f32 %v832_v48, %v813_v41 }
 0x201   : > { %v726_v31 = vadd.f32 %v720_v10, %v654_v7  ;;  %v727_v61 = vadd.f32 %v721_v27, %v655_v3  ;;  %v876_v49 = vmax.f32 %v870_v42, 0.0  ;;  %v875_v20 = vmax.f32 %v869_v30, 0.0 }
 0x203   : > { %v841_v52 = vadd.f32 %v835_v28, %v726_v31  ;;  %v842_v45 = vadd.f32 %v836_v51, %v727_v61  ;;  %v882_v55 = vmin.f32 %v876_v49, 6.0  ;;  %v881_v25 = vmin.f32 %v875_v20, 6.0 }
 0x205   : > { %v866_v62 = vadd.f32 %v856_v34, %v842_v45  ;;  %v865_v11 = vadd.f32 %v856_v34, %v841_v52  ;;  %v888_v34 = vmul.f32 %v882_v55, %v864_v12  ;;  %v887_v50 = vmul.f32 %v881_v25, %v863_v17  ;;  %v893_v17 = vld [vmem:[%s1756_s5] sm:$0xf] }
 0x207   : > { %v620_v29 = vpop.permute.xlu1 %619  ;;  %v626_v32 = vpop.permute.xlu0 %625  ;;  %v872_v36 = vadd.f32 3.0, %v866_v62  ;;  %v871_v58 = vadd.f32 3.0, %v865_v11 }
 0x208   : > { %v630_v26 = vsel %vm627_vm5, %v620_v29, %v626_v32  ;;  %v633_v10 = vsel %vm627_vm5, %v626_v32, %v620_v29 }
 0x209   : > { %v656_v27 = vmul.f32 %v647_v44, %v633_v10  ;;  %v657_v40 = vmul.f32 %v651_v46, %v630_v26  ;;  %v878_v33 = vmax.f32 %v872_v36, 0.0  ;;  %v877_v8 = vmax.f32 %v871_v58, 0.0 }
 0x20b   : > { %v807_v37 = vpop.permute.xlu1 %806  ;;  %v801_v43 = vpop.permute.xlu0 %800  ;;  %v884_v2 = vmin.f32 %v878_v33, 6.0  ;;  %v883_v47 = vmin.f32 %v877_v8, 6.0  ;;  %v728_v53 = vadd.f32 %v1655_v1, %v656_v27  ;;  %v729_v14 = vadd.f32 %v1657_v54, %v657_v40 }
 0x20c   : > { %v811_v16 = vsel %vm808_vm4, %v801_v43, %v807_v37  ;;  %v814_v18 = vsel %vm808_vm4, %v807_v37, %v801_v43 }
 0x20d   : > { %v837_v44 = vmul.f32 %v828_v19, %v811_v16  ;;  %v838_v46 = vmul.f32 %v832_v48, %v814_v18  ;;  %v890_v4 = vmul.f32 %v884_v2, %v866_v62  ;;  %v889_v56 = vmul.f32 %v883_v47, %v865_v11 }
 0x20f   : > { %v843_v57 = vadd.f32 %v837_v44, %v728_v53  ;;  %v844_v5 = vadd.f32 %v838_v46, %v729_v14  ;;  %v1082_v59 = vpack.c.bf16 %v890_v4, %v888_v34  ;;  %v1084_v60 = vpack.c.bf16 %v889_v56, %v887_v50 }
 0x211   : > { %1083 = vmatprep.subr.bf16.mxu1 %v1082_v59  ;;  %v868_v63 = vadd.f32 %v1659_v39, %v844_v5  ;;  %v867_v1 = vadd.f32 %v1659_v39, %v843_v57  ;;  %v1242_v39 = vmov 839922192  }
 0x212   : > { %1085 = vmatpush1.bf16.msra.mxu1 %v1084_v60  ;;  %v980_v22 = vunpack.c.l.s4 %v1242_v39 }
 0x213   : > { %v874_v54 = vadd.f32 3.0, %v868_v63  ;;  %v873_v9 = vadd.f32 3.0, %v867_v1 }
 0x214   : > { %v981_v23 = vunpack.c.0.s8 %v980_v22 }
 0x215   : > { %v880_v0 = vmax.f32 %v874_v54, 0.0  ;;  %v879_v21 = vmax.f32 %v873_v9, 0.0 }
 0x216   : > { %v984_v24 = vsub.s32 %v981_v23, %v1477_v15 }
 0x217   : > { %v886_v13 = vmin.f32 %v880_v0, 6.0  ;;  %v885_v19 = vmin.f32 %v879_v21, 6.0 }
 0x219   : > { %v892_v48 = vmul.f32 %v886_v13, %v868_v63  ;;  %v891_v12 = vmul.f32 %v885_v19, %v867_v1 }
 0x21b   : > { %902 = vmatprep.subr.mxu1 %v892_v48 }
 0x21c   : > { %903 = vmatpush1.msra.mxu1 %v891_v12  ;;  %v978_v35 = vpop.permute.xlu0 %977 }
 0x21d   : > { %1075 = vmatmul.mubr.msk.f32.vlgmr.msra.gmra.mrb[0].mxu1 %vm894_vm6, %v893_v17  ;;  %v985_v3 = vrot.slane %v978_v35, %v984_v24 }
 0x2f0   : > { %v964_v38 = vpop.f32.mrb[0].mxu1 }
 0x2f1   : > { %v966_v41 = vpop.f32.mrb[1].mxu1 }
 0x2f2   : > { %v971_v7 = vcombine.low %v964_v38, %v966_v41 }
 0x2f4   : > { %v973_v42 = vadd.f32 %v971_v7, %v1357_v6 }
 0x2f6   : > { %v987_v30 = vadd.f32 %v985_v3, %v973_v42 }
 0x2f8   : > { %988 = vst [vmem:[%s299_s20] sm:$0xff] %v987_v30 }
 0x2f9   : > { %1177 = shalt.err (!%p1174_p3)
}
 0x2fa   : > { %s1178_s13 = scalar_lea.hbm %s1709_s24, 128  ;;  %s1182_s17 = scalar_lea.hbm %s1759_s8, 256 }
 0x2fb   : > { %p1179_p4 = scmp.ne.s32.totalorder %s1709_s24, %s1178_s13  ;;  %p1183_p9 = scmp.lt.u32.totalorder %s1709_s24, %s1759_s8 }
 0x2fc   : > { %p1184_p10 = scmp.lt.u32.totalorder %s1182_s17, %s1178_s13  ;;  %p1186_p12 = scmp.lt.u32.totalorder %s1178_s13, %s1709_s24 }
 0x2fd   : > { %p1180_p7 = pnand %p1179_p4, %p1327_p5 }
 0x2fe   : > { %p1185_p11 = por %p1184_p10, %p1183_p9 }
 0x2ff   : > { %p1181_p8 = pneg %p1180_p7 }
 0x300   : > { %p1187_p13 = por %p1186_p12, %p1185_p11 }
 0x302   : > { %p1188_p0 = pnand %p1187_p13, %p1181_p8 }
 0x304   : > { %1191 = shalt.err (!%p1188_p0)
}
 0x305   : > { %1086 = dma.vmem_to_hbm [thread:$0]  (%p1327_p5), %s1711_s21, 128, %s1709_s24, %s990_s25  }
 0x306 PF: > { %p1092_p1 = scmp.ge.s32.totalorder %s1226_s30, 2  ;;  %s1016_s23 = sand.u32 1, %s1214_s27  }
 0x307   : > { %s1017_s26 = scalar_lea.sflag [#allocation3], %s1016_s23 }
 0x308   : > { %p1089_p2 = pnand %p1092_p1, %p1331_p6 }
 0x30a   : > { %1209 = dma.done.wait (!%p1089_p2), %s1017_s26, 128  }
 0x30b   : > { %1211 = vsyncadd (!%p1089_p2), %s1017_s26, 4294967168  ;;  %p18_p3 = scmp.ge.s32.totalorder %s1314_s11, 4   ;;  %s1762_s27 = smov %s1218_s28 }
 0x30c   : > { %s1763_s28 = smov %s1222_s29  ;;  %s1764_s29 = smov %s1325_s14 }
 0x30d   : > { %s1765_s30 = smov %s1314_s11  ;;  %20 = sbr.rel (!%p18_p3) target bundleno = 3 (0x3), region = 87 }
 0x314   :  { %1022 = vsyncpa [#allocation3], 1 }
 0x315   :  { %1024 = vsyncpa [#allocation3 + $0x1], 1 }

</bundles_post_ra>
